<compile_context>
chip_gen: v7x
topology: tpu7x:2x2x1
jax: 0.10.0
libtpu: 0.0.40
codegen_flags: <defaults>
</compile_context>

<pallas_src>
import math

import jax
import jax.numpy as jnp
from jax.experimental import pallas as pl
from jax.experimental.pallas import tpu as pltpu


# ----------------------------------------------------------------------------
# Generic tiled matmul kernel (QKV projection and output projection)
# ----------------------------------------------------------------------------
def _matmul_kernel(a_ref, b_ref, o_ref, acc_ref):
    @pl.when(pl.program_id(2) == 0)
    def _():
        acc_ref[...] = jnp.zeros_like(acc_ref)

    acc_ref[...] += jnp.dot(a_ref[...], b_ref[...],
                            preferred_element_type=jnp.float32)

    @pl.when(pl.program_id(2) == pl.num_programs(2) - 1)
    def _():
        o_ref[...] = acc_ref[...].astype(o_ref.dtype)


def _pick_tile(dim, cap, align):
    """Largest `align`-aligned tile <= cap that divides dim, else the full dim."""
    if dim <= cap:
        return dim
    t = (cap // align) * align
    while t >= align:
        if dim % t == 0:
            return t
        t -= align
    return dim


def pallas_matmul(a, b, *, tm_cap=256, tn_cap=256, tk_cap=512):
    """a: (M, K), b: (K, N) -> (M, N), f32 accumulation on the MXU."""
    M, K = a.shape
    K2, N = b.shape
    assert K == K2
    tm = _pick_tile(M, tm_cap, 8)
    tn = _pick_tile(N, tn_cap, 128)
    tk = _pick_tile(K, tk_cap, 128)
    grid = (M // tm, N // tn, K // tk)
    return pl.pallas_call(
        _matmul_kernel,
        out_shape=jax.ShapeDtypeStruct((M, N), a.dtype),
        grid_spec=pltpu.PrefetchScalarGridSpec(
            num_scalar_prefetch=0,
            grid=grid,
            in_specs=[
                pl.BlockSpec((tm, tk), lambda i, j, k: (i, k)),
                pl.BlockSpec((tk, tn), lambda i, j, k: (k, j)),
            ],
            out_specs=pl.BlockSpec((tm, tn), lambda i, j, k: (i, j)),
            scratch_shapes=[pltpu.VMEM((tm, tn), jnp.float32)],
        ),
        compiler_params=pltpu.CompilerParams(
            dimension_semantics=("parallel", "parallel", "arbitrary"),
        ),
    )(a, b)


# ----------------------------------------------------------------------------
# RoPE + scaled-dot-product attention kernel (one (batch, head) per grid step)
# ----------------------------------------------------------------------------
def _rope_attn_kernel(q_ref, k_ref, v_ref, cos_ref, sin_ref, mask_ref, o_ref):
    hd = q_ref.shape[-1]
    h2 = hd // 2
    scale = 1.0 / (hd ** 0.5)

    cos = cos_ref[...]                       # (S, hd//2)
    sin = sin_ref[...]
    # q/k arrive de-interleaved per head ([even pair dims | odd pair dims]),
    # courtesy of the wrapper-side Wq/Wk row permutation.
    q = q_ref[...].astype(jnp.float32)       # (S, hd)
    k = k_ref[...].astype(jnp.float32)

    qa, qb = q[:, :h2], q[:, h2:]
    ka, kb = k[:, :h2], k[:, h2:]
    # rotate-half RoPE on the de-interleaved layout
    qra = qa * cos - qb * sin
    qrb = qb * cos + qa * sin
    kra = ka * cos - kb * sin
    krb = kb * cos + ka * sin

    # rope(q) . rope(k) over head_dim == sum of the two half-width dots
    s = (jnp.dot(qra, kra.T, preferred_element_type=jnp.float32) +
         jnp.dot(qrb, krb.T, preferred_element_type=jnp.float32)) * scale
    s = s + mask_ref[...]                    # additive mask (0 / -1e30)

    m = jnp.max(s, axis=-1, keepdims=True)
    p = jnp.exp(s - m)
    p = p / jnp.sum(p, axis=-1, keepdims=True)

    y = jnp.dot(p.astype(v_ref.dtype), v_ref[...],
                preferred_element_type=jnp.float32)
    o_ref[...] = y.astype(o_ref.dtype)


def pallas_attention_core(q, k, v, cos, sin, mask):
    """q,k,v: (B, H, S, hd); cos,sin: (S, hd//2); mask: (S, S) -> (B, H, S, hd)."""
    B, H, S, hd = q.shape
    return pl.pallas_call(
        _rope_attn_kernel,
        out_shape=jax.ShapeDtypeStruct((B, H, S, hd), q.dtype),
        grid_spec=pltpu.PrefetchScalarGridSpec(
            num_scalar_prefetch=0,
            grid=(B, H),
            in_specs=[
                pl.BlockSpec((None, None, S, hd), lambda b, h: (b, h, 0, 0)),
                pl.BlockSpec((None, None, S, hd), lambda b, h: (b, h, 0, 0)),
                pl.BlockSpec((None, None, S, hd), lambda b, h: (b, h, 0, 0)),
                pl.BlockSpec((S, hd // 2), lambda b, h: (0, 0)),
                pl.BlockSpec((S, hd // 2), lambda b, h: (0, 0)),
                pl.BlockSpec((S, S), lambda b, h: (0, 0)),
            ],
            out_specs=pl.BlockSpec((None, None, S, hd), lambda b, h: (b, h, 0, 0)),
        ),
        compiler_params=pltpu.CompilerParams(
            dimension_semantics=("parallel", "parallel"),
        ),
    )(q, k, v, cos, sin, mask)


# ----------------------------------------------------------------------------
# Full Attention forward (wrapper: weight preprocessing + layout plumbing)
# ----------------------------------------------------------------------------
def _deinterleave_perm(head_dim):
    # [0, 2, ..., hd-2, 1, 3, ..., hd-1]
    return jnp.concatenate([jnp.arange(0, head_dim, 2), jnp.arange(1, head_dim, 2)])


def attention_forward(x, wqkv, wo, freqs_cis, mask, *,
                      n_head, n_local_heads, head_dim):
    """Pallas version of gpt-fast Attention.forward (prefill path, no kv-cache).

    x:         (B, S, D)
    wqkv:      ((n_head + 2*n_local_heads) * head_dim, D)   PyTorch (out, in) layout
    wo:        (D, D)
    freqs_cis: (S, head_dim//2, 2) with [..., 0]=cos, [..., 1]=sin
    mask:      (S, S) additive float mask
    """
    B, S, D = x.shape
    q_size = n_head * head_dim
    kv_size = n_local_heads * head_dim
    assert q_size == D

    # --- wrapper-side weight preprocessing (layout only) ---
    perm = _deinterleave_perm(head_dim)
    wq = wqkv[:q_size]
    wk = wqkv[q_size:q_size + kv_size]
    wv = wqkv[q_size + kv_size:]

    def _permute_rows(w, heads):
        return w.reshape(heads, head_dim, D)[:, perm, :].reshape(heads * head_dim, D)

    wqkv_t = jnp.concatenate(
        [_permute_rows(wq, n_head), _permute_rows(wk, n_local_heads), wv], axis=0).T
    wo_t = wo.T

    cos = freqs_cis[..., 0]
    sin = freqs_cis[..., 1]

    # --- (1) fused QKV projection ---
    x2d = x.reshape(B * S, D)
    qkv = pallas_matmul(x2d, wqkv_t)                          # (B*S, q + 2*kv)

    q = qkv[:, :q_size].reshape(B, S, n_head, head_dim).transpose(0, 2, 1, 3)
    k = qkv[:, q_size:q_size + kv_size].reshape(
        B, S, n_local_heads, head_dim).transpose(0, 2, 1, 3)
    v = qkv[:, q_size + kv_size:].reshape(
        B, S, n_local_heads, head_dim).transpose(0, 2, 1, 3)

    rep = n_head // n_local_heads
    if rep > 1:  # GQA repeat_interleave (layout plumbing)
        k = jnp.repeat(k, rep, axis=1)
        v = jnp.repeat(v, rep, axis=1)

    # --- (2) RoPE + attention, per (batch, head) ---
    y = pallas_attention_core(q, k, v, cos, sin, mask)        # (B, H, S, hd)

    # --- (3) output projection ---
    y2d = y.transpose(0, 2, 1, 3).reshape(B * S, n_head * head_dim)
    out = pallas_matmul(y2d, wo_t)
    return out.reshape(B, S, D)

# TODO(synk): kv_cache.update / input_pos decode path not implemented (cache is
# None in the reference forward that is being matched here).


# ----------------------------------------------------------------------------
# Pure-JAX reference mirroring the PyTorch module
# ----------------------------------------------------------------------------
def _apply_rotary_emb_ref(x, freqs_cis):
    xs = x.astype(jnp.float32).reshape(*x.shape[:-1], -1, 2)
    fc = freqs_cis.reshape(1, xs.shape[1], 1, xs.shape[3], 2)
    out = jnp.stack([
        xs[..., 0] * fc[..., 0] - xs[..., 1] * fc[..., 1],
        xs[..., 1] * fc[..., 0] + xs[..., 0] * fc[..., 1],
    ], axis=-1)
    return out.reshape(x.shape).astype(x.dtype)


def attention_ref(x, wqkv, wo, freqs_cis, mask, *, n_head, n_local_heads, head_dim):
    B, S, D = x.shape
    q_size = n_head * head_dim
    kv_size = n_local_heads * head_dim
    qkv = x @ wqkv.T
    q = qkv[..., :q_size].reshape(B, S, n_head, head_dim)
    k = qkv[..., q_size:q_size + kv_size].reshape(B, S, n_local_heads, head_dim)
    v = qkv[..., q_size + kv_size:].reshape(B, S, n_local_heads, head_dim)
    q = _apply_rotary_emb_ref(q, freqs_cis)
    k = _apply_rotary_emb_ref(k, freqs_cis)
    q, k, v = (t.transpose(0, 2, 1, 3) for t in (q, k, v))
    rep = n_head // n_local_heads
    k = jnp.repeat(k, rep, axis=1)
    v = jnp.repeat(v, rep, axis=1)
    s = jnp.einsum('bhqd,bhkd->bhqk', q, k) / math.sqrt(head_dim) + mask
    p = jax.nn.softmax(s, axis=-1)
    y = jnp.einsum('bhqk,bhkd->bhqd', p, v)
    y = y.transpose(0, 2, 1, 3).reshape(B, S, D)
    return y @ wo.T


if __name__ == "__main__":
    # Small config consistent with ModelArgs: head_dim = dim // n_head.
    dim, n_head, n_local_heads = 256, 4, 4
    head_dim = dim // n_head                       # 64
    batch, seq = 2, 8
    total_head_dim = (n_head + 2 * n_local_heads) * head_dim   # 768

    key = jax.random.PRNGKey(0)
    kx, kqkv, ko = jax.random.split(key, 3)

    x = jax.random.normal(kx, (batch, seq, dim), dtype=jnp.float32)
    wqkv = jax.random.normal(kqkv, (total_head_dim, dim), jnp.float32) / math.sqrt(dim)
    wo = jax.random.normal(ko, (dim, dim), jnp.float32) / math.sqrt(dim)

    half = head_dim // 2
    inv_freq = 1.0 / (10000.0 ** (jnp.arange(half, dtype=jnp.float32) * 2.0 / head_dim))
    pos = jnp.arange(seq, dtype=jnp.float32)
    ang = jnp.outer(pos, inv_freq)                                   # (S, hd//2)
    freqs_cis = jnp.stack([jnp.cos(ang), jnp.sin(ang)], axis=-1)     # (S, hd//2, 2)

    causal = jnp.tril(jnp.ones((seq, seq), dtype=bool))
    mask = jnp.where(causal, 0.0, -1e30).astype(jnp.float32)         # additive mask

    out = attention_forward(x, wqkv, wo, freqs_cis, mask,
                            n_head=n_head, n_local_heads=n_local_heads,
                            head_dim=head_dim)
    out = jax.block_until_ready(out)

    ref = attention_ref(x, wqkv, wo, freqs_cis, mask,
                        n_head=n_head, n_local_heads=n_local_heads,
                        head_dim=head_dim)

    assert out.shape == (batch, seq, dim)
    err = jnp.max(jnp.abs(out - ref))
    assert jnp.allclose(out, ref, atol=2e-2, rtol=2e-2), (
        f"Pallas kernel mismatch vs reference (max abs err {err})")

    print("KERNEL_OK")
</pallas_src>

<mosaic_0001>
module attributes {stable_mosaic.version = 11 : i64} {
  func.func @_matmul_kernel(%arg0: i32, %arg1: i32, %arg2: i32, %arg3: memref<16x256xf32, #tpu.memory_space<vmem>>, %arg4: memref<256x256xf32, #tpu.memory_space<vmem>>, %arg5: memref<16x256xf32, #tpu.memory_space<vmem>>, %arg6: memref<16x256xf32, #tpu.memory_space<vmem>>) attributes {dimension_semantics = [#tpu.dimension_semantics<parallel>, #tpu.dimension_semantics<parallel>, #tpu.dimension_semantics<arbitrary>], iteration_bounds = array<i64: 1, 3, 1>, scalar_prefetch = 0 : i64, scratch_operands = 1 : i64, tpu.core_type = #tpu.core_type<tc>, window_params = [{transform_indices = @transform_0, window_bounds = array<i64: 16, 256>}, {transform_indices = @transform_1, window_bounds = array<i64: 256, 256>}, {transform_indices = @transform_2, window_bounds = array<i64: 16, 256>}]} {
    %c0_i32 = arith.constant 0 : i32
    %0 = arith.cmpi eq, %arg2, %c0_i32 : i32
    %1 = arith.extui %0 : i1 to i32
    %c0_i32_0 = arith.constant 0 : i32
    %2 = arith.cmpi ne, %1, %c0_i32_0 : i32
    scf.if %2 {
      %cst_10 = arith.constant 0.000000e+00 : f32
      %12 = vector.broadcast %cst_10 : f32 to vector<16x256xf32>
      %c0_11 = arith.constant 0 : index
      %c0_12 = arith.constant 0 : index
      %13 = vector.load %arg6[%c0_11, %c0_12] : memref<16x256xf32, #tpu.memory_space<vmem>>, vector<16x256xf32>
      tpu.vector_store %arg6[%c0_11, %c0_12], %12 {strides = array<i32>} : memref<16x256xf32, #tpu.memory_space<vmem>>, vector<16x256xf32>,
    } else {
    }
    %c0 = arith.constant 0 : index
    %c0_1 = arith.constant 0 : index
    %3 = vector.load %arg6[%c0, %c0_1] : memref<16x256xf32, #tpu.memory_space<vmem>>, vector<16x256xf32>
    %c0_2 = arith.constant 0 : index
    %c0_3 = arith.constant 0 : index
    %4 = vector.load %arg3[%c0_2, %c0_3] : memref<16x256xf32, #tpu.memory_space<vmem>>, vector<16x256xf32>
    %c0_4 = arith.constant 0 : index
    %c0_5 = arith.constant 0 : index
    %5 = vector.load %arg4[%c0_4, %c0_5] : memref<256x256xf32, #tpu.memory_space<vmem>>, vector<256x256xf32>
    %cst = arith.constant dense<0.000000e+00> : vector<16x256xf32>
    %6 = tpu.matmul %4, %5, %cst {dimension_numbers = #tpu.dot_dimension_numbers<[1], [0], [0], [1], [0, 0, 1, 1], [], []>} : vector<16x256xf32>, vector<256x256xf32>, vector<16x256xf32> -> vector<16x256xf32>
    %7 = arith.addf %3, %6 : vector<16x256xf32>
    %c0_6 = arith.constant 0 : index
    %c0_7 = arith.constant 0 : index
    %8 = vector.load %arg6[%c0_6, %c0_7] : memref<16x256xf32, #tpu.memory_space<vmem>>, vector<16x256xf32>
    tpu.vector_store %arg6[%c0_6, %c0_7], %7 {strides = array<i32>} : memref<16x256xf32, #tpu.memory_space<vmem>>, vector<16x256xf32>,
    %c0_i32_8 = arith.constant 0 : i32
    %9 = arith.cmpi eq, %arg2, %c0_i32_8 : i32
    %10 = arith.extui %9 : i1 to i32
    %c0_i32_9 = arith.constant 0 : i32
    %11 = arith.cmpi ne, %10, %c0_i32_9 : i32
    scf.if %11 {
      %c0_10 = arith.constant 0 : index
      %c0_11 = arith.constant 0 : index
      %12 = vector.load %arg6[%c0_10, %c0_11] : memref<16x256xf32, #tpu.memory_space<vmem>>, vector<16x256xf32>
      %c0_12 = arith.constant 0 : index
      %c0_13 = arith.constant 0 : index
      %13 = vector.load %arg5[%c0_12, %c0_13] : memref<16x256xf32, #tpu.memory_space<vmem>>, vector<16x256xf32>
      tpu.vector_store %arg5[%c0_12, %c0_13], %12 {strides = array<i32>} : memref<16x256xf32, #tpu.memory_space<vmem>>, vector<16x256xf32>,
    } else {
    }
    return
  }
  func.func @transform_0(%arg0: i32, %arg1: i32, %arg2: i32) -> (i32, i32) {
    %c0_i32 = arith.constant 0 : i32
    return %arg0, %arg2 : i32, i32
  }
  func.func @transform_1(%arg0: i32, %arg1: i32, %arg2: i32) -> (i32, i32) {
    %c0_i32 = arith.constant 0 : i32
    return %arg2, %arg1 : i32, i32
  }
  func.func @transform_2(%arg0: i32, %arg1: i32, %arg2: i32) -> (i32, i32) {
    %c0_i32 = arith.constant 0 : i32
    return %arg0, %arg1 : i32, i32
  }
}

</mosaic_0001>

<bundles_post_ra>
// kernel: tpu_custom_call.1
= control target key start
LH: loop header
LB: loop body
LE: loop exit
PB: predicated region body
PF: predicated region fallthrough
CT: control target
= control target key end

     0   :  { %7 = vsyncpa [#allocation4], 0  ;;  %s1169_s0 = inlined_call_operand.hbm [shape: f32[16,256], index: 0, kind: input, shape index: {}]   ;;  %s1170_s1 = inlined_call_operand.hbm [shape: f32[256,768], index: 1, kind: input, shape index: {}]   ;;  %s1171_s2 = inlined_call_operand.hbm [shape: f32[16,768], index: 2, kind: output, shape index: {}]  }
   0x1   :  { %8 = vsyncpa [#allocation7], 0 }
   0x2   :  { %10 = vsyncpa [#allocation7 + $0x1], 0 }
   0x3   :  { %11 = vsyncpa [#allocation5], 0 }
   0x4   :  { %13 = vsyncpa [#allocation5 + $0x1], 0  ;;  %s886_s9 = smov 0   ;;  %s888_s10 = smov 0  }
   0x5   :  { %s890_s11 = smov 0   ;;  %s892_s12 = smov 0  }
   0x6   :  { %s894_s13 = smov 0   ;;  %s896_s14 = smov 0  }
   0x7 LB: > { %s522_s15 = sadd.s32 4294967295, %s860_s14   ;;  %s523_s16 = sadd.s32 4294967294, %s860_s14   ;;  %s860_s14 = sphi %s896_s14, %s19_s14   ;;  %s856_s13 = sphi %s894_s13, %s1196_s13   ;;  %s852_s12 = sphi %s892_s12, %s1195_s12   ;;  %s848_s11 = sphi %s890_s11, %s1194_s11   ;;  %s844_s10 = sphi %s888_s10, %s1193_s10   ;;  %s840_s9 = sphi %s886_s9, %s1192_s9  }
   0x8   : > { %p82_p0 = scmp.ne.s32.totalorder %s848_s11, %s844_s10  ;;  %p83_p1 = scmp.eq.s32.totalorder %s860_s14, 0 }
   0x9   : > { %p88_p2 = scmp.ne.s32.totalorder %s844_s10, %s840_s9  ;;  %p923_p3 = scmp.eq.s32.totalorder %s522_s15, 0 }
   0xa   : > { %p927_p4 = por %p83_p1, %p82_p0  ;;  %p114_p5 = scmp.eq.s32.totalorder %s522_s15, 2 }
   0xb   : > { %s1178_s17 = scalar_select %p923_p3, 1, 0 }
   0xc   : > { %p933_p6 = por %p923_p3, %p88_p2  ;;  %p120_p7 = scmp.eq.s32.totalorder %s523_s16, 2 }
   0xd   : > { %p937_p8 = por %p114_p5, %p82_p0  ;;  %p524_p9 = scmp.ge.s32.totalorder %s860_s14, 1 }
   0xe   : > { %s1180_s19 = scalar_select %p933_p6, 1, 0 }
   0xf   : > { %s1181_s20 = scalar_select %p937_p8, 1, 0 }
  0x10   : > { %p942_p10 = por %p120_p7, %p88_p2  ;;  %p127_p11 = scmp.lt.s32.totalorder %s860_s14, 4 }
  0x11   : > { %s862_s23 = smov [#allocation3]   ;;  %p658_p0 = scmp.lt.s32.totalorder %s860_s14, 3 }
  0x12   : > { %s1182_s21 = scalar_select %p942_p10, 1, 0 }
  0x13   : > { %p947_p12 = pnand %p524_p9, %p127_p11  ;;  %s145_s24 = sshll.u32 %s862_s23, 4  ;;  %s146_s24 = int_to_ptr.vmem [resolvable:$true] %s145_s24 }
  0x14   : > { %p962_p2 = pnand %p658_p0, %p927_p4  ;;  %s34_s27 = sadd.s32 1, %s856_s13 }
  0x15   : > { %s1183_s22 = scalar_select %p947_p12, 1, 0 }
  0x16   : > { %p645_p13 = pneg %p947_p12  ;;  %s716_s30 = scalar_lea.hbm %s1169_s0, 512 }
  0x17   : > { %s1185_s26 = scalar_select %p962_p2, 1, 0 }
  0x18   : > { %p956_p1 = pnand %p645_p13, %p923_p3  ;;  %p717_p5 = scmp.ne.s32.totalorder %s1169_s0, %s716_s30 }
  0x19   : > { %p723_p4 = scmp.lt.u32.totalorder %s716_s30, %s1169_s0 }
  0x1a   : > { %p718_p7 = pneg %p956_p1 }
  0x1c   : > { %p719_p9 = pnand %p718_p7, %p717_p5 }
  0x1e   : > { %p720_p11 = pneg %p719_p9 }
  0x20   : > { %p725_p13 = pnand %p723_p4, %p720_p11 }
  0x22   : > { %728 = shalt.err (!%p725_p13)
}
  0x23   : > { %s729_s7 = scalar_lea.vmem %s146_s24, 512  ;;  %p737_p6 = scmp.lt.s32.totalorder %s146_s24, %s146_s24 }
  0x24   : > { %p730_p0 = scmp.ne.s32.totalorder %s146_s24, %s729_s7  ;;  %p738_p3 = scmp.lt.s32.totalorder %s729_s7, %s729_s7 }
  0x26   : > { %p732_p10 = pnand %p730_p0, %p718_p7  ;;  %p739_p12 = por %p738_p3, %p737_p6 }
  0x28   : > { %p733_p8 = pneg %p732_p10 }
  0x2a   : > { %p740_p2 = pnand %p739_p12, %p733_p8 }
  0x2c   : > { %743 = shalt.err (!%p740_p2)
}
  0x2d   : > { %s863_s8 = smov 256   ;;  %s864_s15 = smov 16  }
  0x2e   : > { %648 = dma.hbm_to_vmem [thread:$0]  (!%p956_p1), %s1169_s0, 512, %s146_s24, [#allocation4], %s863_s8, %s863_s8, %s864_s15  }
  0x2f   : > { %p36_p10 = scmp.ge.s32.totalorder %s34_s27, 3  ;;  %s75_s23 = sadd.s32 1, %s848_s11 }
  0x30   : > { %s159_s28 = sand.u32 1, %s848_s11   ;;  %s539_s3 = sshll.u32 %s856_s13, 8 }
  0x31   : > { %s1198_s27 = smov (%p36_p10, %s34_s27), 0  ;;  %s527_s29 = sshll.u32 %s159_s28, 9 }
  0x32   : > { %s71_s30 = ssub.s32 %s856_s13, %s1198_s27  ;;  %s996_s5 = scalar_lea.hbm %s1170_s1, %s539_s3 }
  0x33   : > { %p73_p3 = scmp.eq.s32.totalorder %s71_s30, 0  ;;  %s163_s24 = scalar_lea.vmem [#allocation6], %s527_s29 }
  0x34   : > { %s173_s6 = sshll.u32 %s163_s24, 4  ;;  %s1003_s16 = scalar_lea.sflag [#allocation7], %s159_s28  ;;  %s1001_s6 = int_to_ptr.vmem [resolvable:$true] %s173_s6 }
  0x35   : > { %s999_s7 = scalar_select %p73_p3, %s848_s11, %s75_s23  }
  0x36   : > { %s744_s18 = scalar_lea.hbm %s996_s5, 8192  ;;  %p1186_p8 = scmp.ne.s32.totalorder %s1185_s26, 0 }
  0x37   : > { %p745_p6 = scmp.ne.s32.totalorder %s996_s5, %s744_s18  ;;  %s749_s25 = scalar_lea.hbm %s1170_s1, 24576 }
  0x38   : > { %p746_p12 = pneg %p1186_p8  ;;  %p750_p5 = scmp.lt.u32.totalorder %s996_s5, %s1170_s1 }
  0x39   : > { %p751_p7 = scmp.lt.u32.totalorder %s749_s25, %s744_s18  ;;  %p753_p11 = scmp.lt.u32.totalorder %s744_s18, %s996_s5 }
  0x3a   : > { %p747_p1 = pnand %p746_p12, %p745_p6 }
  0x3b   : > { %p752_p9 = por %p751_p7, %p750_p5 }
  0x3c   : > { %p748_p2 = pneg %p747_p1 }
  0x3d   : > { %p754_p4 = por %p753_p11, %p752_p9 }
  0x3f   : > { %p755_p13 = pnand %p754_p4, %p748_p2 }
  0x41   : > { %758 = shalt.err (!%p755_p13)
}
  0x42   : > { %s759_s23 = scalar_lea.vmem %s1001_s6, 8192  ;;  %s865_s28 = smov [#allocation6]  }
  0x43   : > { %p760_p0 = scmp.ne.s32.totalorder %s1001_s6, %s759_s23  ;;  %s764_s24 = sshll.u32 %s865_s28, 4  ;;  %s765_s24 = int_to_ptr.vmem [resolvable:$false] %s764_s24 }
  0x44   : > { %s766_s30 = scalar_lea.vmem %s765_s24, 16384  ;;  %p767_p6 = scmp.lt.s32.totalorder %s1001_s6, %s765_s24 }
  0x45   : > { %p762_p10 = pnand %p760_p0, %p746_p12  ;;  %p768_p1 = scmp.lt.s32.totalorder %s766_s30, %s759_s23 }
  0x47   : > { %p763_p3 = pneg %p762_p10  ;;  %p769_p5 = por %p768_p1, %p767_p6 }
  0x49   : > { %p770_p7 = pnand %p769_p5, %p763_p3 }
  0x4b   : > { %773 = shalt.err (!%p770_p7)
}
  0x4c   : > { %s866_s18 = smov 768   ;;  %p1187_p12 = scmp.ne.s32.totalorder %s1183_s22, 0 }
  0x4d   : > { %652 = dma.hbm_to_vmem [thread:$0]  (!%p1186_p8), %s996_s5, 8192, %s1001_s6, %s1003_s16, %s866_s18, %s863_s8, %s864_s15  }
  0x4e   : > { %185 = sbr.rel (%p1187_p12) target bundleno = 386 (0x182), region = 28  ;;  %p1188_p2 = scmp.ne.s32.totalorder (!%p1187_p12), %s1178_s17, 0 }
  0x55   : > { %827 = dma.done.wait (%p1188_p2), [#allocation4], 512  }
  0x56   : > { %829 = vsyncadd (%p1188_p2), [#allocation4], 4294966784  ;;  %s1040_s3 = sand.u32 1, %s844_s10   ;;  %p1189_p8 = scmp.ne.s32.totalorder %s1180_s19, 0 }
  0x57   : > { %s532_s26 = sshll.u32 %s1040_s3, 9  ;;  %s192_s25 = scalar_lea.sflag [#allocation7], %s1040_s3 }
  0x58   : > { %s1044_s29 = scalar_lea.vmem [#allocation6], %s532_s26 }
  0x59   : > { %831 = dma.done.wait (%p1189_p8), %s192_s25, 8192  }
  0x5a   : > { %833 = vsyncadd (%p1189_p8), %s192_s25, 4294959104  ;;  %v239_v0 = vld [vmem:[%s1044_s29 + $0x8] sm:$0xff]  ;;  %v241_v1 = vld [vmem:[%s1044_s29 + $0x18] sm:$0xff]  ;;  %s533_s17 = sshll.u32 %s1040_s3, 5  ;;  %s540_s8 = sshll.u32 %s852_s12, 8 }
  0x5b   : > { %v238_v2 = vld [vmem:[%s1044_s29] sm:$0xff]  ;;  %v541_v3 = vpack.c.bf16 %v241_v1, %v239_v0  ;;  %v240_v4 = vld [vmem:[%s1044_s29 + $0x10] sm:$0xff]  ;;  %v243_v5 = vld [vmem:[%s1044_s29 + $0x28] sm:$0xff]  ;;  %s215_s19 = scalar_lea.vmem [#allocation8], %s533_s17  ;;  %s1121_s6 = scalar_lea.hbm %s1171_s2, %s540_s8 }
  0x5c   : > { %v245_v6 = vld [vmem:[%s1044_s29 + $0x38] sm:$0xff]  ;;  %v543_v7 = vpack.c.bf16 %v240_v4, %v238_v2  ;;  %v242_v9 = vld [vmem:[%s1044_s29 + $0x20] sm:$0xff]  ;;  %v244_v10 = vld [vmem:[%s1044_s29 + $0x30] sm:$0xff]  ;;  %s415_s22 = sshll.u32 %s215_s19, 4  ;;  %s399_s16 = scalar_lea.sflag [#allocation5], %s1040_s3  ;;  %s1116_s22 = int_to_ptr.vmem [resolvable:$true] %s415_s22 }
  0x5d   : > { %v545_v8 = vpack.c.bf16 %v245_v6, %v243_v5  ;;  %v247_v11 = vld [vmem:[%s1044_s29 + $0x48] sm:$0xff]  ;;  %542 = vmatprep.subr.bf16.mxu0 %v541_v3  ;;  %605 = vmatprep.subr.bf16.mxu1 %v541_v3  ;;  %v249_v12 = vld [vmem:[%s1044_s29 + $0x58] sm:$0xff]  ;;  %v547_v13 = vpack.c.bf16 %v244_v10, %v242_v9  ;;  %v246_v15 = vld [vmem:[%s1044_s29 + $0x40] sm:$0xff]  ;;  %s774_s12 = scalar_lea.vmem %s1116_s22, 512  ;;  %p1190_p11 = scmp.ne.s32.totalorder %s1181_s20, 0 }
  0x5e   : > { %544 = vmatpush1.bf16.msra.mxu0 %v543_v7  ;;  %621 = vmatpush1.bf16.msra.mxu1 %v543_v7  ;;  %v549_v14 = vpack.c.bf16 %v249_v12, %v247_v11  ;;  %v248_v16 = vld [vmem:[%s1044_s29 + $0x50] sm:$0xff]  ;;  %v251_v17 = vld [vmem:[%s1044_s29 + $0x68] sm:$0xff]  ;;  %v253_v18 = vld [vmem:[%s1044_s29 + $0x78] sm:$0xff]  ;;  %p775_p9 = scmp.ne.s32.totalorder %s1116_s22, %s774_s12  ;;  %s867_s4 = smov [#allocation8]  }
  0x5f   : > { %546 = vmatprep.subr.bf16.mxu0 %v545_v8  ;;  %606 = vmatprep.subr.bf16.mxu1 %v545_v8  ;;  %v551_v19 = vpack.c.bf16 %v248_v16, %v246_v15  ;;  %v553_v20 = vpack.c.bf16 %v253_v18, %v251_v17  ;;  %v250_v21 = vld [vmem:[%s1044_s29 + $0x60] sm:$0xff]  ;;  %v252_v22 = vld [vmem:[%s1044_s29 + $0x70] sm:$0xff]  ;;  %v255_v23 = vld [vmem:[%s1044_s29 + $0x88] sm:$0xff]  ;;  %s778_s23 = sshll.u32 %s867_s4, 4  ;;  %s779_s23 = int_to_ptr.vmem [resolvable:$false] %s778_s23 }
  0x60   : > { %v257_v24 = vld [vmem:[%s1044_s29 + $0x98] sm:$0xff]  ;;  %v555_v25 = vpack.c.bf16 %v252_v22, %v250_v21  ;;  %v254_v27 = vld [vmem:[%s1044_s29 + $0x80] sm:$0xff]  ;;  %v256_v28 = vld [vmem:[%s1044_s29 + $0x90] sm:$0xff]  ;;  %p776_p4 = pnand %p775_p9, %p1190_p11  ;;  %s780_s28 = scalar_lea.vmem %s779_s23, 1024 }
  0x61   : > { %v557_v26 = vpack.c.bf16 %v257_v24, %v255_v23  ;;  %v259_v29 = vld [vmem:[%s1044_s29 + $0xa8] sm:$0xff]  ;;  %v261_v30 = vld [vmem:[%s1044_s29 + $0xb8] sm:$0xff]  ;;  %v559_v31 = vpack.c.bf16 %v256_v28, %v254_v27  ;;  %v258_v33 = vld [vmem:[%s1044_s29 + $0xa0] sm:$0xff]  ;;  %p781_p0 = scmp.lt.s32.totalorder %s1116_s22, %s779_s23  ;;  %p782_p10 = scmp.lt.s32.totalorder %s780_s28, %s774_s12 }
  0x62   : > { %548 = vmatpush1.bf16.msra.mxu0 %v547_v13  ;;  %622 = vmatpush1.bf16.msra.mxu1 %v547_v13  ;;  %v561_v32 = vpack.c.bf16 %v261_v30, %v259_v29  ;;  %v260_v34 = vld [vmem:[%s1044_s29 + $0xb0] sm:$0xff]  ;;  %v263_v35 = vld [vmem:[%s1044_s29 + $0xc8] sm:$0xff]  ;;  %v265_v36 = vld [vmem:[%s1044_s29 + $0xd8] sm:$0xff]  ;;  %p777_p13 = pneg %p776_p4 }
  0x63   : > { %550 = vmatprep.subr.bf16.mxu0 %v549_v14  ;;  %607 = vmatprep.subr.bf16.mxu1 %v549_v14  ;;  %v563_v37 = vpack.c.bf16 %v260_v34, %v258_v33  ;;  %v262_v38 = vld [vmem:[%s1044_s29 + $0xc0] sm:$0xff]  ;;  %v565_v39 = vpack.c.bf16 %v265_v36, %v263_v35  ;;  %v264_v40 = vld [vmem:[%s1044_s29 + $0xd0] sm:$0xff]  ;;  %v235_v41 = vld [vmem:[#allocation3 + $0x8] sm:$0xff]  ;;  %p783_p3 = por %p782_p10, %p781_p0 }
  0x64   : > { %v237_v42 = vld [vmem:[#allocation3 + $0x18] sm:$0xff]  ;;  %v267_v43 = vld [vmem:[%s1044_s29 + $0xe8] sm:$0xff]  ;;  %366 = vmatprep.mubr.f32.mxu0 %v235_v41  ;;  %v567_v45 = vpack.c.bf16 %v264_v40, %v262_v38  ;;  %v266_v47 = vld [vmem:[%s1044_s29 + $0xe0] sm:$0xff] }
  0x65   : > { %v269_v44 = vld [vmem:[%s1044_s29 + $0xf8] sm:$0xff]  ;;  %372 = vmatprep.mubr.f32.mxu1 %v237_v42  ;;  %v268_v48 = vld [vmem:[%s1044_s29 + $0xf0] sm:$0xff]  ;;  %v271_v49 = vld [vmem:[%s1044_s29 + $0x108] sm:$0xff]  ;;  %p784_p6 = pnand %p783_p3, %p777_p13 }
  0x66   : > { %552 = vmatpush1.bf16.msra.mxu0 %v551_v19  ;;  %623 = vmatpush1.bf16.msra.mxu1 %v551_v19  ;;  %v569_v46 = vpack.c.bf16 %v269_v44, %v267_v43  ;;  %v273_v50 = vld [vmem:[%s1044_s29 + $0x118] sm:$0xff]  ;;  %v571_v51 = vpack.c.bf16 %v268_v48, %v266_v47  ;;  %v270_v53 = vld [vmem:[%s1044_s29 + $0x100] sm:$0xff]  ;;  %v272_v54 = vld [vmem:[%s1044_s29 + $0x110] sm:$0xff] }
  0x67   : > { %554 = vmatprep.subr.bf16.mxu0 %v553_v20  ;;  %608 = vmatprep.subr.bf16.mxu1 %v553_v20  ;;  %v573_v52 = vpack.c.bf16 %v273_v50, %v271_v49  ;;  %v275_v55 = vld [vmem:[%s1044_s29 + $0x128] sm:$0xff]  ;;  %v277_v56 = vld [vmem:[%s1044_s29 + $0x138] sm:$0xff]  ;;  %v575_v57 = vpack.c.bf16 %v272_v54, %v270_v53  ;;  %v274_v59 = vld [vmem:[%s1044_s29 + $0x120] sm:$0xff] }
  0x68   : > { %v577_v58 = vpack.c.bf16 %v277_v56, %v275_v55  ;;  %v276_v60 = vld [vmem:[%s1044_s29 + $0x130] sm:$0xff]  ;;  %v279_v61 = vld [vmem:[%s1044_s29 + $0x148] sm:$0xff]  ;;  %v281_v62 = vld [vmem:[%s1044_s29 + $0x158] sm:$0xff] }
  0x69   : > { %v579_v63 = vpack.c.bf16 %v276_v60, %v274_v59  ;;  %v581_v0 = vpack.c.bf16 %v281_v62, %v279_v61  ;;  %v278_v1 = vld [vmem:[%s1044_s29 + $0x140] sm:$0xff]  ;;  %v280_v2 = vld [vmem:[%s1044_s29 + $0x150] sm:$0xff]  ;;  %v283_v3 = vld [vmem:[%s1044_s29 + $0x168] sm:$0xff] }
  0x6a   : > { %556 = vmatpush1.bf16.msra.mxu0 %v555_v25  ;;  %624 = vmatpush1.bf16.msra.mxu1 %v555_v25  ;;  %v285_v4 = vld [vmem:[%s1044_s29 + $0x178] sm:$0xff]  ;;  %v583_v5 = vpack.c.bf16 %v280_v2, %v278_v1  ;;  %v282_v7 = vld [vmem:[%s1044_s29 + $0x160] sm:$0xff]  ;;  %v284_v8 = vld [vmem:[%s1044_s29 + $0x170] sm:$0xff] }
  0x6b   : > { %558 = vmatprep.subr.bf16.mxu0 %v557_v26  ;;  %609 = vmatprep.subr.bf16.mxu1 %v557_v26  ;;  %v585_v6 = vpack.c.bf16 %v285_v4, %v283_v3  ;;  %v287_v9 = vld [vmem:[%s1044_s29 + $0x188] sm:$0xff]  ;;  %v289_v10 = vld [vmem:[%s1044_s29 + $0x198] sm:$0xff]  ;;  %v587_v11 = vpack.c.bf16 %v284_v8, %v282_v7  ;;  %v286_v13 = vld [vmem:[%s1044_s29 + $0x180] sm:$0xff] }
  0x6c   : > { %v589_v12 = vpack.c.bf16 %v289_v10, %v287_v9  ;;  %v288_v14 = vld [vmem:[%s1044_s29 + $0x190] sm:$0xff]  ;;  %v291_v15 = vld [vmem:[%s1044_s29 + $0x1a8] sm:$0xff]  ;;  %v293_v16 = vld [vmem:[%s1044_s29 + $0x1b8] sm:$0xff] }
  0x6d   : > { %v591_v17 = vpack.c.bf16 %v288_v14, %v286_v13  ;;  %v593_v18 = vpack.c.bf16 %v293_v16, %v291_v15  ;;  %v290_v19 = vld [vmem:[%s1044_s29 + $0x1a0] sm:$0xff]  ;;  %v292_v20 = vld [vmem:[%s1044_s29 + $0x1b0] sm:$0xff]  ;;  %v295_v21 = vld [vmem:[%s1044_s29 + $0x1c8] sm:$0xff] }
  0x6e   : > { %560 = vmatpush1.bf16.msra.mxu0 %v559_v31  ;;  %625 = vmatpush1.bf16.msra.mxu1 %v559_v31  ;;  %v297_v22 = vld [vmem:[%s1044_s29 + $0x1d8] sm:$0xff]  ;;  %v595_v23 = vpack.c.bf16 %v292_v20, %v290_v19  ;;  %v294_v25 = vld [vmem:[%s1044_s29 + $0x1c0] sm:$0xff]  ;;  %v296_v26 = vld [vmem:[%s1044_s29 + $0x1d0] sm:$0xff] }
  0x6f   : > { %562 = vmatprep.subr.bf16.mxu0 %v561_v32  ;;  %610 = vmatprep.subr.bf16.mxu1 %v561_v32  ;;  %v597_v24 = vpack.c.bf16 %v297_v22, %v295_v21  ;;  %v299_v27 = vld [vmem:[%s1044_s29 + $0x1e8] sm:$0xff]  ;;  %v301_v28 = vld [vmem:[%s1044_s29 + $0x1f8] sm:$0xff]  ;;  %v599_v29 = vpack.c.bf16 %v296_v26, %v294_v25  ;;  %v298_v31 = vld [vmem:[%s1044_s29 + $0x1e0] sm:$0xff] }
  0x70   : > { %v601_v30 = vpack.c.bf16 %v301_v28, %v299_v27  ;;  %v300_v32 = vld [vmem:[%s1044_s29 + $0x1f0] sm:$0xff]  ;;  %v234_v34 = vld [vmem:[#allocation3] sm:$0xff] }
  0x71   : > { %v603_v33 = vpack.c.bf16 %v300_v32, %v298_v31  ;;  %v236_v35 = vld [vmem:[#allocation3 + $0x10] sm:$0xff] }
  0x72   : > { %564 = vmatpush1.bf16.msra.mxu0 %v563_v37  ;;  %626 = vmatpush1.bf16.msra.mxu1 %v563_v37 }
  0x73   : > { %566 = vmatprep.subr.bf16.mxu0 %v565_v39  ;;  %611 = vmatprep.subr.bf16.mxu1 %v565_v39 }
  0x76   : > { %568 = vmatpush1.bf16.msra.mxu0 %v567_v45  ;;  %627 = vmatpush1.bf16.msra.mxu1 %v567_v45 }
  0x77   : > { %570 = vmatprep.subr.bf16.mxu0 %v569_v46  ;;  %612 = vmatprep.subr.bf16.mxu1 %v569_v46 }
  0x7a   : > { %572 = vmatpush1.bf16.msra.mxu0 %v571_v51  ;;  %628 = vmatpush1.bf16.msra.mxu1 %v571_v51 }
  0x7b   : > { %574 = vmatprep.subr.bf16.mxu0 %v573_v52  ;;  %613 = vmatprep.subr.bf16.mxu1 %v573_v52 }
  0x7e   : > { %576 = vmatpush1.bf16.msra.mxu0 %v575_v57  ;;  %629 = vmatpush1.bf16.msra.mxu1 %v575_v57 }
  0x7f   : > { %578 = vmatprep.subr.bf16.mxu0 %v577_v58  ;;  %614 = vmatprep.subr.bf16.mxu1 %v577_v58 }
  0x82   : > { %580 = vmatpush1.bf16.msra.mxu0 %v579_v63  ;;  %630 = vmatpush1.bf16.msra.mxu1 %v579_v63 }
  0x83   : > { %582 = vmatprep.subr.bf16.mxu0 %v581_v0  ;;  %615 = vmatprep.subr.bf16.mxu1 %v581_v0 }
  0x86   : > { %584 = vmatpush1.bf16.msra.mxu0 %v583_v5  ;;  %631 = vmatpush1.bf16.msra.mxu1 %v583_v5 }
  0x87   : > { %586 = vmatprep.subr.bf16.mxu0 %v585_v6  ;;  %616 = vmatprep.subr.bf16.mxu1 %v585_v6 }
  0x8a   : > { %588 = vmatpush1.bf16.msra.mxu0 %v587_v11  ;;  %632 = vmatpush1.bf16.msra.mxu1 %v587_v11 }
  0x8b   : > { %590 = vmatprep.subr.bf16.mxu0 %v589_v12  ;;  %617 = vmatprep.subr.bf16.mxu1 %v589_v12 }
  0x8e   : > { %592 = vmatpush1.bf16.msra.mxu0 %v591_v17  ;;  %633 = vmatpush1.bf16.msra.mxu1 %v591_v17 }
  0x8f   : > { %594 = vmatprep.subr.bf16.mxu0 %v593_v18  ;;  %618 = vmatprep.subr.bf16.mxu1 %v593_v18 }
  0x92   : > { %596 = vmatpush1.bf16.msra.mxu0 %v595_v23  ;;  %634 = vmatpush1.bf16.msra.mxu1 %v595_v23 }
  0x93   : > { %598 = vmatprep.subr.bf16.mxu0 %v597_v24  ;;  %619 = vmatprep.subr.bf16.mxu1 %v597_v24 }
  0x96   : > { %600 = vmatpush1.bf16.msra.mxu0 %v599_v29  ;;  %635 = vmatpush1.bf16.msra.mxu1 %v599_v29 }
  0x97   : > { %602 = vmatprep.subr.bf16.mxu0 %v601_v30  ;;  %620 = vmatprep.subr.bf16.mxu1 %v601_v30 }
  0x9a   : > { %604 = vmatpush1.bf16.msra.mxu0 %v603_v33  ;;  %636 = vmatpush1.bf16.msra.mxu1 %v603_v33 }
  0x9d   : > { %367 = vmatmul.mubr.f32.vlgmr.msra.gmra.mrb[0].mxu0 %v234_v34  ;;  %373 = vmatmul.mubr.f32.vlgmr.msra.gmra.mrb[0].mxu1 %v236_v35 }
 0x170   : > { %v368_v36 = vpop.f32.mrb[0].mxu0  ;;  %v374_v37 = vpop.f32.mrb[0].mxu1 }
 0x171   : > { %394 = vst [vmem:[%s215_s19] sm:$0xff] %v368_v36  ;;  %396 = vst [vmem:[%s215_s19 + $0x10] sm:$0xff] %v374_v37  ;;  %v370_v38 = vpop.f32.mrb[1].mxu0  ;;  %v376_v39 = vpop.f32.mrb[1].mxu1 }
 0x172   : > { %395 = vst [vmem:[%s215_s19 + $0x8] sm:$0xff] %v370_v38  ;;  %397 = vst [vmem:[%s215_s19 + $0x18] sm:$0xff] %v376_v39 }
 0x173   : > { %787 = shalt.err (!%p784_p6)
}
 0x174   : > { %s788_s24 = scalar_lea.hbm %s1121_s6, 512  ;;  %s792_s26 = scalar_lea.hbm %s1171_s2, 1536 }
 0x175   : > { %p789_p1 = scmp.ne.s32.totalorder %s1121_s6, %s788_s24  ;;  %p793_p12 = scmp.lt.u32.totalorder %s1121_s6, %s1171_s2 }
 0x176   : > { %p794_p2 = scmp.lt.u32.totalorder %s792_s26, %s788_s24  ;;  %p796_p9 = scmp.lt.u32.totalorder %s788_s24, %s1121_s6 }
 0x177   : > { %p790_p5 = pnand %p789_p1, %p1190_p11 }
 0x178   : > { %p795_p8 = por %p794_p2, %p793_p12 }
 0x179   : > { %p791_p7 = pneg %p790_p5 }
 0x17a   : > { %p797_p4 = por %p796_p9, %p795_p8 }
 0x17c   : > { %p798_p13 = pnand %p797_p4, %p791_p7 }
 0x17e   : > { %801 = shalt.err (!%p798_p13)
}
 0x17f   : > { %s868_s17 = smov 256   ;;  %s869_s19 = smov 768  }
 0x180   : > { %s870_s8 = smov 16  }
 0x181   : > { %643 = dma.vmem_to_hbm [thread:$0]  (%p1190_p11), %s1116_s22, 512, %s1121_s6, %s399_s16, %s868_s17, %s869_s19, %s870_s8  }
 0x182 PF: > { %p660_p0 = scmp.ge.s32.totalorder %s860_s14, 2  ;;  %s430_s15 = sand.u32 1, %s840_s9  }
 0x183   : > { %p1191_p10 = scmp.ne.s32.totalorder %s1182_s21, 0  ;;  %s431_s5 = scalar_lea.sflag [#allocation5], %s430_s15 }
 0x185   : > { %p654_p3 = pnand %p660_p0, %p1191_p10 }
 0x187   : > { %835 = dma.done.wait (!%p654_p3), %s431_s5, 512  }
 0x188   : > { %837 = vsyncadd (!%p654_p3), %s431_s5, 4294966784  ;;  %s19_s14 = sadd.s32 1, %s860_s14   ;;  %s1192_s9 = smov %s844_s10 }
 0x189   : > { %p16_p6 = scmp.ge.s32.totalorder %s19_s14, 5   ;;  %s1193_s10 = smov %s848_s11 }
 0x18a   : > { %s1194_s11 = smov %s999_s7  ;;  %s1195_s12 = smov %s856_s13 }
 0x18b   : > { %s1196_s13 = smov %s1198_s27  ;;  %18 = sbr.rel (!%p16_p6) target bundleno = 7 (0x7), region = 87 }
 0x192   :  { %436 = vsyncpa [#allocation4], 1 }
 0x193   :  { %438 = vsyncpa [#allocation4 + $0x1], 1 }
 0x194   :  { %439 = vsyncpa [#allocation7], 1 }
 0x195   :  { %441 = vsyncpa [#allocation7 + $0x1], 1 }
 0x196   :  { %442 = vsyncpa [#allocation5], 1 }
 0x197   :  { %444 = vsyncpa [#allocation5 + $0x1], 1 }

</bundles_post_ra>
